<compile_context>
chip_gen: v7x
topology: tpu7x:2x2x1
jax: 0.10.0
libtpu: 0.0.40
codegen_flags: <defaults>
</compile_context>

<pallas_src>
import functools

import jax
import jax.numpy as jnp
from jax.experimental import pallas as pl
from jax.experimental.pallas import tpu as pltpu


def _round_up(x, m):
    return (x + m - 1) // m * m


def _lane_group_allsum(x, rep):
    """x: (1, L). Sum lanes congruent mod (L//rep); result broadcast to every lane
    of its group. rep must be a power of two (it is: rep = 128 // C, C | 128)."""
    if rep <= 1:
        return x
    L = x.shape[1]
    step = L // rep
    while step < L:
        x = x + pltpu.roll(x, shift=step, axis=1)
        step *= 2
    return x


def _adain_fused_kernel(eps, n_true, pad_count, rep, f_ref, w_ref, b_ref, o_ref):
    """Single pass: stats + affine apply on a resident (R, tc) column block."""
    f = f_ref[...].astype(jnp.float32)
    n = jnp.float32(n_true)

    s = jnp.sum(f, axis=0, keepdims=True)
    s = _lane_group_allsum(s, rep)
    mean = s * (1.0 / n)

    # Centered variance (numerically robust). Zero-padded entries each contributed
    # exactly mean^2 to the squared-deviation sum; remove them exactly.
    d = f - mean
    sq = jnp.sum(d * d, axis=0, keepdims=True)
    sq = _lane_group_allsum(sq, rep)
    if pad_count > 0:
        sq = sq - jnp.float32(pad_count) * mean * mean
    # Unbiased variance (torch .var default). N==1 uses denom 1 (torch would give
    # NaN; deliberate divergence to keep the output finite).
    denom = jnp.float32(max(n_true - 1, 1))
    var = jnp.maximum(sq / denom, 0.0)

    inv_std = jax.lax.rsqrt(var + jnp.float32(eps))
    scale = w_ref[...].astype(jnp.float32) * inv_std
    shift = b_ref[...].astype(jnp.float32) - mean * scale
    o_ref[...] = (f * scale + shift).astype(o_ref.dtype)


def _adain_stats_kernel(eps, n_true, rep, f_ref, w_ref, b_ref,
                        scale_ref, shift_ref, sum_acc, sumsq_acc):
    """Two-pass fallback, pass 1: accumulate per-lane sum/sumsq over row tiles,
    finalize fused per-channel scale/shift."""
    i = pl.program_id(1)  # row-tile index (reduction axis, last grid axis)

    @pl.when(i == 0)
    def _():
        sum_acc[...] = jnp.zeros_like(sum_acc)
        sumsq_acc[...] = jnp.zeros_like(sumsq_acc)

    f = f_ref[...].astype(jnp.float32)
    sum_acc[...] += jnp.sum(f, axis=0, keepdims=True)
    sumsq_acc[...] += jnp.sum(f * f, axis=0, keepdims=True)

    @pl.when(i == pl.num_programs(1) - 1)
    def _():
        s = _lane_group_allsum(sum_acc[...], rep)
        sq = _lane_group_allsum(sumsq_acc[...], rep)
        n = jnp.float32(n_true)
        mean = s * (1.0 / n)
        denom = jnp.float32(max(n_true - 1, 1))
        # One-pass (sumsq) variance: cheapest for streamed N; clamp guards the
        # cancellation-induced tiny negatives.
        var = jnp.maximum((sq - n * mean * mean) / denom, 0.0)
        inv_std = jax.lax.rsqrt(var + jnp.float32(eps))
        scale = w_ref[...].astype(jnp.float32) * inv_std
        scale_ref[...] = scale
        shift_ref[...] = b_ref[...].astype(jnp.float32) - mean * scale


def _adain_apply_kernel(f_ref, scale_ref, shift_ref, o_ref):
    """Two-pass fallback, pass 2: out = f * scale + shift."""
    f = f_ref[...].astype(jnp.float32)
    o_ref[...] = (f * scale_ref[...] + shift_ref[...]).astype(o_ref.dtype)


def adain_forward(features, weight, bias, eps=1e-5):
    """
    features: (N, C) float array (SCN SparseTensor .features)
    weight, bias: (C,) per-channel affine params (from the AdaptIS controller net).
    Returns (N, C) normalized + affine-transformed features.
    """
    N, C = features.shape
    out_dtype = features.dtype
    itemsize = jnp.dtype(out_dtype).itemsize
    sub = {4: 8, 2: 16, 1: 32}.get(itemsize, 8)   # dtype-aware sublane quantum

    w32 = weight.astype(jnp.float32)
    b32 = bias.astype(jnp.float32)

    # ---- lane layout ---------------------------------------------------------
    if C <= 128 and 128 % C == 0:
        # Pack rep = 128/C points per 128-lane row: zero channel padding,
        # fully lane-dense loads/stores, 128/C x fewer HBM bytes than padding.
        rep = 128 // C
        L = 128
        w_row = jnp.tile(w32, rep).reshape(1, L)
        b_row = jnp.tile(b32, rep).reshape(1, L)
    else:
        # General case: pad channels to a multiple of 128 (only w/b are tiny;
        # feature padding cost is at most <2x and only hit for odd C > 128).
        rep = 1
        L = _round_up(C, 128)
        w_row = jnp.pad(w32, (0, L - C)).reshape(1, L)
        b_row = jnp.pad(b32, (0, L - C)).reshape(1, L)

    # Lane tile: widen up to 512 when many channels (fewer grid steps, longer DMA
    # bursts).  For the packed layout L == 128 so tc == 128.
    tc = 512 if L % 512 == 0 else (256 if L % 256 == 0 else 128)

    # Rows of the (., L) working array needed to hold the N points.
    r_min = (N + rep - 1) // rep

    # Fused single pass if one full (R, tc) column block (f32) is <= 4 MiB:
    # double-buffered in+out plus f32 temps stays well under v7x's 64 MiB VMEM.
    fused = _round_up(r_min, sub) * tc * 4 <= 4 * 1024 * 1024

    if fused:
        R = _round_up(r_min, sub)
        tr = R
    else:
        # Row tile sized so each block is ~4 MiB (tn~2048 @ tc=512, 8192 @ tc=128).
        tr = max(sub, ((4 * 1024 * 1024) // (tc * itemsize)) // sub * sub)
        tr = min(tr, _round_up(r_min, sub))
        R = _round_up(r_min, tr)
    n_work = R * rep
    n_pad_rows = n_work - N   # zero rows: contribute 0 to sums, corrected/divided by true N

    # ---- build the lane-dense working array ----------------------------------
    f = features
    if rep > 1:
        if n_pad_rows:
            f = jnp.pad(f, ((0, n_pad_rows), (0, 0)))
        fw = f.reshape(R, L)
    else:
        if n_pad_rows or L != C:
            f = jnp.pad(f, ((0, n_pad_rows), (0, L - C)))
        fw = f

    if fused:
        # ---- single fused pass: 1 read + 1 write of f ------------------------
        kernel = functools.partial(_adain_fused_kernel, eps, N, n_pad_rows, rep)
        out_w = pl.pallas_call(
            kernel,
            out_shape=jax.ShapeDtypeStruct((R, L), out_dtype),
            grid_spec=pltpu.PrefetchScalarGridSpec(
                num_scalar_prefetch=0,
                grid=(L // tc,),
                in_specs=[
                    pl.BlockSpec((R, tc), lambda j: (0, j)),   # resident column block
                    pl.BlockSpec((1, tc), lambda j: (0, j)),   # weight (lane-tiled)
                    pl.BlockSpec((1, tc), lambda j: (0, j)),   # bias (lane-tiled)
                ],
                out_specs=pl.BlockSpec((R, tc), lambda j: (0, j)),
            ),
            compiler_params=pltpu.CompilerParams(
                dimension_semantics=("parallel",),
                vmem_limit_bytes=40 * 1024 * 1024,
            ),
        )(fw, w_row, b_row)
    else:
        # ---- pass 1: per-channel fused scale / shift --------------------------
        stats_kernel = functools.partial(_adain_stats_kernel, eps, N, rep)
        scale, shift = pl.pallas_call(
            stats_kernel,
            out_shape=(
                jax.ShapeDtypeStruct((1, L), jnp.float32),
                jax.ShapeDtypeStruct((1, L), jnp.float32),
            ),
            grid_spec=pltpu.PrefetchScalarGridSpec(
                num_scalar_prefetch=0,
                grid=(L // tc, R // tr),   # reduction (rows) axis last
                in_specs=[
                    pl.BlockSpec((tr, tc), lambda j, i: (i, j)),
                    pl.BlockSpec((1, tc), lambda j, i: (0, j)),
                    pl.BlockSpec((1, tc), lambda j, i: (0, j)),
                ],
                out_specs=[
                    pl.BlockSpec((1, tc), lambda j, i: (0, j)),
                    pl.BlockSpec((1, tc), lambda j, i: (0, j)),
                ],
                scratch_shapes=[
                    pltpu.VMEM((1, tc), jnp.float32),   # sum accumulator
                    pltpu.VMEM((1, tc), jnp.float32),   # sumsq accumulator
                ],
            ),
            compiler_params=pltpu.CompilerParams(
                dimension_semantics=("parallel", "arbitrary"),
                vmem_limit_bytes=32 * 1024 * 1024,
            ),
        )(fw, w_row, b_row)

        # ---- pass 2: lane-dense elementwise apply ------------------------------
        out_w = pl.pallas_call(
            _adain_apply_kernel,
            out_shape=jax.ShapeDtypeStruct((R, L), out_dtype),
            grid_spec=pltpu.PrefetchScalarGridSpec(
                num_scalar_prefetch=0,
                grid=(R // tr, L // tc),
                in_specs=[
                    pl.BlockSpec((tr, tc), lambda i, j: (i, j)),
                    pl.BlockSpec((1, tc), lambda i, j: (0, j)),
                    pl.BlockSpec((1, tc), lambda i, j: (0, j)),
                ],
                out_specs=pl.BlockSpec((tr, tc), lambda i, j: (i, j)),
            ),
            compiler_params=pltpu.CompilerParams(
                dimension_semantics=("parallel", "parallel"),
                vmem_limit_bytes=32 * 1024 * 1024,
            ),
        )(fw, scale, shift)

    # ---- restore (N, C) layout -------------------------------------------------
    if rep > 1:
        out = out_w.reshape(n_work, C)
        if n_pad_rows:
            out = out[:N]
    else:
        out = out_w[:N, :C] if (n_pad_rows or L != C) else out_w
    return out


def adain_reference(features, weight, bias, eps=1e-5):
    f = features.astype(jnp.float32)
    mean = jnp.mean(f, axis=0)
    var = jnp.var(f, axis=0, ddof=1)  # unbiased, matches torch default
    f_norm = (f - mean) / jnp.sqrt(var + eps)
    return weight * f_norm + bias


if __name__ == "__main__":
    key = jax.random.PRNGKey(0)
    k_f, k_w, k_b = jax.random.split(key, 3)

    num_points = 256        # N sparse points
    num_features = 32       # AdaIN num_features

    # Deterministic synthetic inputs. In AdaptIS, weight/bias come from the
    # controller network; here they are drawn deterministically.
    features = jax.random.normal(k_f, (num_points, num_features), dtype=jnp.float32)
    weight = 1.0 + 0.1 * jax.random.normal(k_w, (num_features,), dtype=jnp.float32)
    bias = 0.1 * jax.random.normal(k_b, (num_features,), dtype=jnp.float32)

    out = adain_forward(features, weight, bias, eps=1e-5)
    out = jax.block_until_ready(out)

    ref = adain_reference(features, weight, bias, eps=1e-5)
    assert out.shape == (num_points, num_features)
    assert jnp.allclose(out, ref, atol=1e-4, rtol=1e-4), "Pallas AdaIN mismatch vs reference"

    # TODO(synk): SCN SparseConvNetTensor metadata/spatial_size passthrough has no
    # Pallas equivalent; only the feature-matrix compute is implemented.
    print("KERNEL_OK")
</pallas_src>

<mosaic_0001>
module attributes {stable_mosaic.version = 11 : i64} {
  func.func @_adain_fused_kernel(%arg0: i32, %arg1: memref<64x128xf32, #tpu.memory_space<vmem>>, %arg2: memref<1x128xf32, #tpu.memory_space<vmem>>, %arg3: memref<1x128xf32, #tpu.memory_space<vmem>>, %arg4: memref<64x128xf32, #tpu.memory_space<vmem>>) attributes {dimension_semantics = [#tpu.dimension_semantics<parallel>], iteration_bounds = array<i64: 1>, scalar_prefetch = 0 : i64, scratch_operands = 0 : i64, tpu.core_type = #tpu.core_type<tc>, window_params = [{transform_indices = @transform_0, window_bounds = array<i64: 64, 128>}, {transform_indices = @transform_1, window_bounds = array<i64: 1, 128>}, {transform_indices = @transform_2, window_bounds = array<i64: 1, 128>}, {transform_indices = @transform_3, window_bounds = array<i64: 64, 128>}]} {
    %c0 = arith.constant 0 : index
    %c0_0 = arith.constant 0 : index
    %0 = vector.load %arg1[%c0, %c0_0] : memref<64x128xf32, #tpu.memory_space<vmem>>, vector<64x128xf32>
    %cst = arith.constant dense<0.000000e+00> : vector<128xf32>
    %1 = vector.multi_reduction <add>, %0, %cst [0] : vector<64x128xf32> to vector<128xf32>
    %2 = vector.shape_cast %1 : vector<128xf32> to vector<1x128xf32>
    %c32_i32 = arith.constant 32 : i32
    %3 = tpu.dynamic_rotate %2 by %c32_i32 dim 1 : vector<1x128xf32>, i32 -> vector<1x128xf32>
    %4 = arith.addf %2, %3 : vector<1x128xf32>
    %c64_i32 = arith.constant 64 : i32
    %5 = tpu.dynamic_rotate %4 by %c64_i32 dim 1 : vector<1x128xf32>, i32 -> vector<1x128xf32>
    %6 = arith.addf %4, %5 : vector<1x128xf32>
    %cst_1 = arith.constant 1.000000e+00 : f32
    %cst_2 = arith.constant 2.560000e+02 : f32
    %7 = arith.divf %cst_1, %cst_2 : f32
    %8 = vector.broadcast %7 : f32 to vector<1x128xf32>
    %9 = arith.mulf %6, %8 : vector<1x128xf32>
    %10 = vector.broadcast %9 : vector<1x128xf32> to vector<64x128xf32>
    %11 = arith.subf %0, %10 : vector<64x128xf32>
    %12 = arith.mulf %11, %11 : vector<64x128xf32>
    %cst_3 = arith.constant dense<0.000000e+00> : vector<128xf32>
    %13 = vector.multi_reduction <add>, %12, %cst_3 [0] : vector<64x128xf32> to vector<128xf32>
    %14 = vector.shape_cast %13 : vector<128xf32> to vector<1x128xf32>
    %c32_i32_4 = arith.constant 32 : i32
    %15 = tpu.dynamic_rotate %14 by %c32_i32_4 dim 1 : vector<1x128xf32>, i32 -> vector<1x128xf32>
    %16 = arith.addf %14, %15 : vector<1x128xf32>
    %c64_i32_5 = arith.constant 64 : i32
    %17 = tpu.dynamic_rotate %16 by %c64_i32_5 dim 1 : vector<1x128xf32>, i32 -> vector<1x128xf32>
    %18 = arith.addf %16, %17 : vector<1x128xf32>
    %cst_6 = arith.constant 2.550000e+02 : f32
    %19 = vector.broadcast %cst_6 : f32 to vector<1x128xf32>
    %20 = arith.divf %18, %19 : vector<1x128xf32>
    %cst_7 = arith.constant 0.000000e+00 : f32
    %21 = vector.broadcast %cst_7 : f32 to vector<1x128xf32>
    %22 = arith.maximumf %20, %21 : vector<1x128xf32>
    %cst_8 = arith.constant 9.99999974E-6 : f32
    %23 = vector.broadcast %cst_8 : f32 to vector<1x128xf32>
    %24 = arith.addf %22, %23 : vector<1x128xf32>
    %25 = math.rsqrt %24 : vector<1x128xf32>
    %c0_9 = arith.constant 0 : index
    %c0_10 = arith.constant 0 : index
    %26 = vector.load %arg2[%c0_9, %c0_10] : memref<1x128xf32, #tpu.memory_space<vmem>>, vector<1x128xf32>
    %27 = arith.mulf %26, %25 : vector<1x128xf32>
    %c0_11 = arith.constant 0 : index
    %c0_12 = arith.constant 0 : index
    %28 = vector.load %arg3[%c0_11, %c0_12] : memref<1x128xf32, #tpu.memory_space<vmem>>, vector<1x128xf32>
    %29 = arith.mulf %9, %27 : vector<1x128xf32>
    %30 = arith.subf %28, %29 : vector<1x128xf32>
    %31 = vector.broadcast %27 : vector<1x128xf32> to vector<64x128xf32>
    %32 = arith.mulf %0, %31 : vector<64x128xf32>
    %33 = vector.broadcast %30 : vector<1x128xf32> to vector<64x128xf32>
    %34 = arith.addf %32, %33 : vector<64x128xf32>
    %c0_13 = arith.constant 0 : index
    %c0_14 = arith.constant 0 : index
    %35 = vector.load %arg4[%c0_13, %c0_14] : memref<64x128xf32, #tpu.memory_space<vmem>>, vector<64x128xf32>
    tpu.vector_store %arg4[%c0_13, %c0_14], %34 {strides = array<i32>} : memref<64x128xf32, #tpu.memory_space<vmem>>, vector<64x128xf32>,
    return
  }
  func.func @transform_0(%arg0: i32) -> (i32, i32) {
    %c0_i32 = arith.constant 0 : i32
    %c0_i32_0 = arith.constant 0 : i32
    return %c0_i32, %arg0 : i32, i32
  }
  func.func @transform_1(%arg0: i32) -> (i32, i32) {
    %c0_i32 = arith.constant 0 : i32
    %c0_i32_0 = arith.constant 0 : i32
    return %c0_i32, %arg0 : i32, i32
  }
  func.func @transform_2(%arg0: i32) -> (i32, i32) {
    %c0_i32 = arith.constant 0 : i32
    %c0_i32_0 = arith.constant 0 : i32
    return %c0_i32, %arg0 : i32, i32
  }
  func.func @transform_3(%arg0: i32) -> (i32, i32) {
    %c0_i32 = arith.constant 0 : i32
    %c0_i32_0 = arith.constant 0 : i32
    return %c0_i32, %arg0 : i32, i32
  }
}

</mosaic_0001>

<bundles_post_ra>
// kernel: tpu_custom_call.1
= control target key start
LH: loop header
LB: loop body
LE: loop exit
PB: predicated region body
PF: predicated region fallthrough
CT: control target
= control target key end

     0   :  { %8 = vsyncpa [#allocation3], 0  ;;  %s321_s0 = inlined_call_operand.hbm [shape: f32[64,128], index: 0, kind: input, shape index: {}]   ;;  %s322_s1 = inlined_call_operand.vmem [shape: f32[1,128], index: 1, kind: input, shape index: {}]   ;;  %s323_s2 = inlined_call_operand.vmem [shape: f32[1,128], index: 2, kind: input, shape index: {}]   ;;  %s324_s3 = inlined_call_operand.hbm [shape: f32[64,128], index: 3, kind: output, shape index: {}]  }
   0x1   :  { %9 = vsyncpa [#allocation4], 0  ;;  %s215_s12 = smov [#allocation2]   ;;  %s167_s16 = scalar_lea.hbm %s321_s0, 1024 }
   0x2   :  { %s15_s13 = sshll.u32 %s215_s12, 4  ;;  %p168_p0 = scmp.ne.s32.totalorder %s321_s0, %s167_s16  ;;  %s16_s13 = int_to_ptr.vmem [resolvable:$true] %s15_s13 }
   0x3   :  { %p171_p1 = scmp.lt.u32.totalorder %s167_s16, %s321_s0 }
   0x5   :  { %p173_p2 = pnand %p171_p1, %p168_p0 }
   0x7   :  { %176 = shalt.err (!%p173_p2)
}
   0x8   :  { %s177_s21 = scalar_lea.vmem %s16_s13, 1024  ;;  %p182_p4 = scmp.lt.s32.totalorder %s16_s13, %s16_s13 }
   0x9   :  { %p178_p3 = scmp.ne.s32.totalorder %s16_s13, %s177_s21  ;;  %p183_p5 = scmp.lt.s32.totalorder %s177_s21, %s177_s21 }
   0xb   :  { %p184_p6 = por %p183_p5, %p182_p4 }
   0xd   :  { %p185_p7 = pnand %p184_p6, %p178_p3 }
   0xf   :  { %188 = shalt.err (!%p185_p7)
}
  0x10   :  { %s216_s22 = smov 128   ;;  %s217_s23 = smov 8  }
  0x11   :  { %21 = dma.hbm_to_vmem [thread:$0]  %s321_s0, 1024, %s16_s13, [#allocation3], %s216_s22, %s216_s22, %s217_s23  }
  0x12   :  { %211 = dma.done.wait [#allocation3], 1024  }
  0x13   :  { %212 = vsyncadd [#allocation3], 4294966272  ;;  %v256_v0 = vld [vmem:[#allocation2] sm:$0xff]  ;;  %v258_v1 = vld [vmem:[#allocation2 + $0x8] sm:$0xff]  ;;  %s218_s0 = smov 32   ;;  %s219_s26 = smov 64   ;;  %v57_v23 = vlaneseq }
  0x14   :  { %v260_v2 = vld [vmem:[#allocation2 + $0x10] sm:$0xff]  ;;  %v37_v3 = vadd.f32 %v258_v1, %v256_v0  ;;  %v264_v4 = vld [vmem:[#allocation2 + $0x18] sm:$0xff]  ;;  %v267_v6 = vld [vmem:[#allocation2 + $0x20] sm:$0xff]  ;;  %s220_s4 = smov [#allocation5]  }
  0x15   :  { %v270_v8 = vld [vmem:[#allocation2 + $0x28] sm:$0xff]  ;;  %v273_v10 = vld [vmem:[#allocation2 + $0x30] sm:$0xff]  ;;  %v276_v12 = vld [vmem:[#allocation2 + $0x38] sm:$0xff]  ;;  %v58_v24 = vshrl.u32 %v57_v23, 7 }
  0x16   :  { %v38_v5 = vadd.f32 %v37_v3, %v260_v2 }
  0x17   :  { %v59_v26 = vsub.s32 0, %v58_v24 }
  0x18   :  { %v39_v7 = vadd.f32 %v38_v5, %v264_v4 }
  0x1a   :  { %v40_v9 = vadd.f32 %v39_v7, %v267_v6  ;;  %v101_v7 = vld [vmem:[%s322_s1] sm:$0x1]  ;;  %s147_s1 = sshll.u32 %s220_s4, 4  ;;  %s148_s1 = int_to_ptr.vmem [resolvable:$true] %s147_s1 }
  0x1b   :  { %p194_p9 = scmp.lt.s32.totalorder %s148_s1, %s148_s1 }
  0x1c   :  { %v41_v11 = vadd.f32 %v40_v9, %v270_v8 }
  0x1e   :  { %v42_v13 = vadd.f32 %v41_v11, %v273_v10 }
  0x20   :  { %v43_v14 = vadd.f32 %v42_v13, %v276_v12  ;;  %v103_v13 = vld [vmem:[%s323_s2] sm:$0x1]  ;;  %s189_s2 = scalar_lea.vmem %s148_s1, 1024 }
  0x21   :  { %p190_p8 = scmp.ne.s32.totalorder %s148_s1, %s189_s2  ;;  %p195_p10 = scmp.lt.s32.totalorder %s189_s2, %s189_s2 }
  0x22   :  { %v44_v15 = vrot.slane %v43_v14, 4 }
  0x23   :  { %p196_p11 = por %p195_p10, %p194_p9 }
  0x24   :  { %v45_v16 = vadd.f32 %v44_v15, %v43_v14 }
  0x25   :  { %p197_p12 = pnand %p196_p11, %p190_p8 }
  0x26   :  { %v46_v17 = vrot.slane %v45_v16, 2 }
  0x28   :  { %v47_v18 = vadd.f32 %v46_v17, %v45_v16 }
  0x2a   :  { %v48_v19 = vrot.slane %v47_v18, 1 }
  0x2c   :  { %v49_v20 = vadd.f32 %v48_v19, %v47_v18 }
  0x2e   :  { %50 = vrot.lane.b32.xlu0 %v49_v20, %s218_s0 }
  0xa0   :  { %v51_v21 = vpop.permute.xlu0 %50 }
  0xa1   :  { %v52_v22 = vadd.f32 %v51_v21, %v49_v20 }
  0xa3   :  { %53 = vrot.lane.b32.xlu0 %v52_v22, %s219_s26 }
 0x115   :  { %v54_v25 = vpop.permute.xlu0 %53 }
 0x116   :  { %v55_v27 = vadd.f32 %v54_v25, %v52_v22 }
 0x118   :  { %v56_v28 = vmul.f32 0.00390625, %v55_v27 }
 0x11a   :  { %v60_v29 = vrot.slane %v56_v28, %v59_v26 }
 0x11c   :  { %v61_v30 = vsub.f32 %v256_v0, %v60_v29  ;;  %v62_v31 = vsub.f32 %v258_v1, %v60_v29  ;;  %v63_v32 = vsub.f32 %v260_v2, %v60_v29  ;;  %v64_v33 = vsub.f32 %v264_v4, %v60_v29 }
 0x11d   :  { %v65_v36 = vsub.f32 %v267_v6, %v60_v29  ;;  %v66_v39 = vsub.f32 %v270_v8, %v60_v29  ;;  %v67_v42 = vsub.f32 %v273_v10, %v60_v29  ;;  %v68_v45 = vsub.f32 %v276_v12, %v60_v29 }
 0x11e   :  { %v69_v34 = vmul.f32 %v61_v30, %v61_v30  ;;  %v70_v35 = vmul.f32 %v62_v31, %v62_v31  ;;  %v71_v37 = vmul.f32 %v63_v32, %v63_v32  ;;  %v72_v40 = vmul.f32 %v64_v33, %v64_v33 }
 0x11f   :  { %v73_v43 = vmul.f32 %v65_v36, %v65_v36  ;;  %v74_v46 = vmul.f32 %v66_v39, %v66_v39  ;;  %v75_v48 = vmul.f32 %v67_v42, %v67_v42  ;;  %v76_v50 = vmul.f32 %v68_v45, %v68_v45 }
 0x120   :  { %v77_v38 = vadd.f32 %v70_v35, %v69_v34 }
 0x122   :  { %v78_v41 = vadd.f32 %v77_v38, %v71_v37 }
 0x124   :  { %v79_v44 = vadd.f32 %v78_v41, %v72_v40 }
 0x126   :  { %v80_v47 = vadd.f32 %v79_v44, %v73_v43 }
 0x128   :  { %v81_v49 = vadd.f32 %v80_v47, %v74_v46 }
 0x12a   :  { %v82_v51 = vadd.f32 %v81_v49, %v75_v48 }
 0x12c   :  { %v83_v52 = vadd.f32 %v82_v51, %v76_v50 }
 0x12e   :  { %v84_v53 = vrot.slane %v83_v52, 4 }
 0x130   :  { %v85_v54 = vadd.f32 %v84_v53, %v83_v52 }
 0x132   :  { %v86_v55 = vrot.slane %v85_v54, 2 }
 0x134   :  { %v87_v56 = vadd.f32 %v86_v55, %v85_v54 }
 0x136   :  { %v88_v57 = vrot.slane %v87_v56, 1 }
 0x138   :  { %v89_v58 = vadd.f32 %v88_v57, %v87_v56 }
 0x13a   :  { %90 = vrot.lane.b32.xlu1 %v89_v58, %s218_s0 }
 0x1ac   :  { %v91_v59 = vpop.permute.xlu1 %90 }
 0x1ad   :  { %v92_v60 = vadd.f32 %v91_v59, %v89_v58 }
 0x1af   :  { %93 = vrot.lane.b32.xlu1 %v92_v60, %s219_s26 }
 0x221   :  { %v94_v61 = vpop.permute.xlu1 %93 }
 0x222   :  { %v95_v62 = vadd.f32 %v94_v61, %v92_v60 }
 0x224   :  { %v97_v63 = vmul.f32 0.003921569, %v95_v62 }
 0x226   :  { %v98_v3 = vmax.f32 %v97_v63, 0.0 }
 0x228   :  { %v99_v5 = vadd.f32 1e-05, %v98_v3 }
 0x22a   :  { %165 = vrsqrt.f32 %v99_v5 }
 0x234   :  { %v166_v9 = vpop.eup %165 }
 0x235   :  { %v102_v11 = vmul.f32 %v166_v9, %v101_v7 }
 0x237   :  { %v104_v14 = vmul.f32 %v102_v11, %v56_v28  ;;  %v110_v15 = vrot.slane %v102_v11, %v59_v26 }
 0x239   :  { %v105_v16 = vsub.f32 %v103_v13, %v104_v14  ;;  %v112_v17 = vmul.f32 %v110_v15, %v256_v0  ;;  %v113_v19 = vmul.f32 %v110_v15, %v258_v1  ;;  %v114_v20 = vmul.f32 %v110_v15, %v260_v2 }
 0x23a   :  { %v115_v21 = vmul.f32 %v110_v15, %v264_v4  ;;  %v116_v22 = vmul.f32 %v110_v15, %v267_v6  ;;  %v117_v23 = vmul.f32 %v110_v15, %v270_v8  ;;  %v118_v24 = vmul.f32 %v110_v15, %v273_v10 }
 0x23b   :  { %v124_v18 = vrot.slane %v105_v16, %v59_v26  ;;  %v119_v25 = vmul.f32 %v110_v15, %v276_v12 }
 0x23d   :  { %v126_v27 = vadd.f32 %v124_v18, %v112_v17  ;;  %v127_v28 = vadd.f32 %v124_v18, %v113_v19  ;;  %v128_v0 = vadd.f32 %v124_v18, %v114_v20  ;;  %v129_v26 = vadd.f32 %v124_v18, %v115_v21 }
 0x23e   :  { %v130_v29 = vadd.f32 %v124_v18, %v116_v22  ;;  %v131_v1 = vadd.f32 %v124_v18, %v117_v23  ;;  %v132_v30 = vadd.f32 %v124_v18, %v118_v24  ;;  %v133_v2 = vadd.f32 %v124_v18, %v119_v25 }
 0x23f   :  { %134 = vst [vmem:[#allocation5] sm:$0xff] %v126_v27  ;;  %135 = vst [vmem:[#allocation5 + $0x8] sm:$0xff] %v127_v28 }
 0x240   :  { %136 = vst [vmem:[#allocation5 + $0x10] sm:$0xff] %v128_v0  ;;  %137 = vst [vmem:[#allocation5 + $0x18] sm:$0xff] %v129_v26 }
 0x241   :  { %138 = vst [vmem:[#allocation5 + $0x20] sm:$0xff] %v130_v29  ;;  %139 = vst [vmem:[#allocation5 + $0x28] sm:$0xff] %v131_v1 }
 0x242   :  { %140 = vst [vmem:[#allocation5 + $0x30] sm:$0xff] %v132_v30  ;;  %141 = vst [vmem:[#allocation5 + $0x38] sm:$0xff] %v133_v2 }
 0x243   :  { %200 = shalt.err (!%p197_p12)
}
 0x244   :  { %s201_s7 = scalar_lea.hbm %s324_s3, 1024 }
 0x245   :  { %p202_p13 = scmp.ne.s32.totalorder %s324_s3, %s201_s7  ;;  %p205_p0 = scmp.lt.u32.totalorder %s201_s7, %s324_s3 }
 0x247   :  { %p207_p1 = pnand %p205_p0, %p202_p13 }
 0x249   :  { %210 = shalt.err (!%p207_p1)
}
 0x24a   :  { %153 = dma.vmem_to_hbm [thread:$0]  %s148_s1, 1024, %s324_s3, [#allocation4], %s216_s22, %s216_s22, %s217_s23  }
 0x24b   :  { %213 = dma.done.wait [#allocation4], 1024  }
 0x24c   :  { %214 = vsyncadd [#allocation4], 4294966272 }
 0x24d   :  { %157 = vsyncpa [#allocation3], 1 }
 0x24e   :  { %158 = vsyncpa [#allocation4], 1 }

</bundles_post_ra>
